<compile_context>
chip_gen: v7x
topology: tpu7x:2x2x1
jax: 0.10.0
libtpu: 0.0.40
codegen_flags: <defaults>
</compile_context>

<pallas_src>
import jax
import jax.numpy as jnp
from jax import lax
from jax.experimental import pallas as pl
from jax.experimental.pallas import tpu as pltpu

BN_EPS = 1e-5
_NRAW = 5                                   # raw features per sample
_H1 = 4                                     # fcm1 output features
_NSTATS = _H1 + (_H1 * (_H1 + 1)) // 2      # 4 first moments + 10 unique second moments = 14


def _round_up(x, m):
    return ((x + m - 1) // m) * m


def _stats_kernel(n_ref, w1_ref, b1_ref, x_ref, acc_ref):
    """Pass 1: sufficient statistics of z1 = fcm1([x, var, mean]).

    x_ref  : (5, R, 128) VMEM block (feature, sublane-chunk, lane) of the batch.
    acc_ref: (1, 14, 8, 128) output block, resident across the inner grid axis;
             rows 0..3 hold per-(sublane,lane) partial sums of z1_j, rows 4..13
             partial sums of z1_j*z1_k (j<=k).  Padded lanes are masked so the
             BatchNorm batch statistics stay exact under tiling.
    """
    p = pl.program_id(0)
    i = pl.program_id(1)
    t_inner = pl.num_programs(1)
    rows = x_ref.shape[1]
    n_sub = rows // 8

    @pl.when(i == 0)
    def _init():
        acc_ref[...] = jnp.zeros_like(acc_ref)

    n_valid = n_ref[0]
    base = ((p * t_inner + i) * rows) * 128       # global sample index of this block's first element

    # Tiny weights: scalar SMEM reads, hoisted out of the loop.
    w = [[w1_ref[j, k] for k in range(_NRAW + 2)] for j in range(_H1)]
    b = [b1_ref[j] for j in range(_H1)]

    def body(s, carry):
        off = pl.multiple_of(s * 8, 8)
        xs = [x_ref[k, pl.ds(off, 8), :] for k in range(_NRAW)]     # 5 x (8,128)

        # Per-sample mean / unbiased variance over the 5 raw features
        # (stable deviation form, matching torch.var_mean).
        mean = (xs[0] + xs[1] + xs[2] + xs[3] + xs[4]) * (1.0 / _NRAW)
        dev = [xk - mean for xk in xs]
        var = (dev[0] * dev[0] + dev[1] * dev[1] + dev[2] * dev[2]
               + dev[3] * dev[3] + dev[4] * dev[4]) * (1.0 / (_NRAW - 1))

        row = lax.broadcasted_iota(jnp.int32, (8, 128), 0)
        lane = lax.broadcasted_iota(jnp.int32, (8, 128), 1)
        sample = base + (off + row) * 128 + lane
        valid = sample < n_valid

        # z1_j = b1[j] + sum_k W1[j,k] * x7_k  -- scalar*vector VPU FMAs.
        z = []
        for j in range(_H1):
            acc = b[j] + w[j][_NRAW] * var + w[j][_NRAW + 1] * mean
            for k in range(_NRAW):
                acc = acc + w[j][k] * xs[k]
            z.append(jnp.where(valid, acc, 0.0))

        new = []
        idx = 0
        for j in range(_H1):
            new.append(carry[idx] + z[j])
            idx += 1
        for j in range(_H1):
            for k in range(j, _H1):
                new.append(carry[idx] + z[j] * z[k])
                idx += 1
        return tuple(new)

    init = tuple(jnp.zeros((8, 128), jnp.float32) for _ in range(_NSTATS))
    sums = lax.fori_loop(0, n_sub, body, init, unroll=min(8, n_sub))

    # Single full-tile accumulator update per grid step (no masked partial stores).
    acc_ref[...] += jnp.stack(sums, axis=0)[None]


def _apply_kernel(dm_ref, dc_ref, x_ref, out_ref):
    """Pass 2: logit difference d = dm . x7 + dc, then p0 = 1/(1+exp(d)).

    One exp + one approx reciprocal (EUP) per sample; only p0 is written
    (the wrapper reconstructs p1 = 1 - p0).  Fully lane/sublane parallel.
    """
    xs = [x_ref[k] for k in range(_NRAW)]                          # 5 x (R,128)
    mean = (xs[0] + xs[1] + xs[2] + xs[3] + xs[4]) * (1.0 / _NRAW)
    dev = [xk - mean for xk in xs]
    var = (dev[0] * dev[0] + dev[1] * dev[1] + dev[2] * dev[2]
           + dev[3] * dev[3] + dev[4] * dev[4]) * (1.0 / (_NRAW - 1))

    d = dc_ref[0] + dm_ref[_NRAW] * var + dm_ref[_NRAW + 1] * mean
    for k in range(_NRAW):
        d = d + dm_ref[k] * xs[k]

    out_ref[...] = pl.reciprocal(1.0 + jnp.exp(d), approx=True)


def _fold_bn_affine(stats, n, params):
    """Fold fcm1 / BN1 / fcm2 / BN2 (training-mode batch stats) into a single
    affine map from the 7-feature augmented input to the 2 pre-softmax logits.

    Pure-XLA glue on 4x4 matrices -- O(1) work regardless of batch size.
    stats: (14,) = [sum z1_j (4), sum z1_j z1_k for j<=k (10)].
    """
    f32 = jnp.float32
    w1 = params["w1"].astype(f32)      # (4, 7)
    b1 = params["b1"].astype(f32)      # (4,)
    g1 = params["g1"].astype(f32)
    be1 = params["be1"].astype(f32)
    w2 = params["w2"].astype(f32)      # (2, 4)
    b2 = params["b2"].astype(f32)
    g2 = params["g2"].astype(f32)
    be2 = params["be2"].astype(f32)

    nf = f32(n)
    mu1 = stats[:_H1] / nf                                         # E[z1]
    q = stats[_H1:]
    e2 = jnp.zeros((_H1, _H1), f32)                                # E[z1 z1^T]
    r = 0
    for j in range(_H1):
        for k in range(j, _H1):
            e2 = e2.at[j, k].set(q[r] / nf)
            e2 = e2.at[k, j].set(q[r] / nf)
            r += 1
    c1 = e2 - jnp.outer(mu1, mu1)                                  # biased Cov[z1] (BN uses biased var)

    a1 = g1 * lax.rsqrt(jnp.diagonal(c1) + BN_EPS)                 # BN1 scale
    a2w = w2 * a1[None, :]                                         # z2 = z1 @ a2w.T + c2
    c2 = b2 + (be1 - a1 * mu1) @ w2.T
    mu2 = a2w @ mu1 + c2                                           # E[z2]
    var2 = jnp.diagonal(a2w @ c1 @ a2w.T)                          # biased Var[z2]
    a2 = g2 * lax.rsqrt(var2 + BN_EPS)                             # BN2 scale

    m = ((w1.T @ a2w.T) * a2[None, :]).T                           # (2, 7): x7 -> logits
    c = (b1 @ a2w.T + c2 - mu2) * a2 + be2                         # (2,)
    return m, c


def network_forward(x1, x2, params, *, block_rows=512):
    """Pallas forward of `Network`. x2 is accepted (signature parity) but unused.

    block_rows: sublane-rows per grid block (multiple of 8); 512 -> 1.25 MiB
    input blocks, safe on v5e/v6e/v7x scoped-VMEM defaults.
    """
    del x2
    n, nfeat = x1.shape
    assert nfeat == _NRAW, "fcm1 expects 5 raw features (+ var, mean -> 7)"

    chunks = -(-n // 128)                          # 128-lane chunks of the batch
    rows = min(block_rows, _round_up(max(chunks, 1), 8))
    rows = _round_up(rows, 8)
    c_pad = _round_up(max(chunks, 1), 2 * rows)    # 2x: leading parallel axis in pass 1
    n_pad = c_pad * 128
    t_inner = c_pad // (2 * rows)                  # inner ("arbitrary") grid for pass 1
    n_tiles = c_pad // rows                        # grid for pass 2

    # (batch, 5) -> (5, chunks, 128): batch on sublanes AND lanes. One fused
    # XLA cast+transpose+pad+reshape shared by both kernel passes.
    x1t = jnp.pad(x1.astype(jnp.float32).T, ((0, 0), (0, n_pad - n)))
    x1t = x1t.reshape(_NRAW, c_pad, 128)

    n_arr = jnp.array([n], jnp.int32)
    w1 = params["w1"].astype(jnp.float32)
    b1 = params["b1"].astype(jnp.float32)

    smem = pl.BlockSpec(memory_space=pltpu.MemorySpace.SMEM)

    # ---- pass 1: sufficient statistics of z1 (reduction over batch blocks) ----
    stats_raw = pl.pallas_call(
        _stats_kernel,
        out_shape=jax.ShapeDtypeStruct((2, _NSTATS, 8, 128), jnp.float32),
        grid=(2, t_inner),
        in_specs=[smem, smem, smem,
                  pl.BlockSpec((_NRAW, rows, 128),
                               lambda p, i: (0, p * t_inner + i, 0))],
        out_specs=pl.BlockSpec((1, _NSTATS, 8, 128), lambda p, i: (p, 0, 0, 0)),
        compiler_params=pltpu.CompilerParams(
            dimension_semantics=("parallel", "arbitrary")),
    )(n_arr, w1, b1, x1t)

    stats = jnp.sum(stats_raw, axis=(0, 2, 3))                     # (14,) exact batch sums

    # ---- tiny O(4x4) fold of BN1 / fcm2 / BN2 into one (2,7) affine ----
    m, c = _fold_bn_affine(stats, n, params)
    dm = m[1] - m[0]                                               # logit-difference weights (7,)
    dc = jnp.reshape(c[1] - c[0], (1,))

    # ---- pass 2: logit diff + sigmoid over independent blocks ("parallel") ----
    p0_t = pl.pallas_call(
        _apply_kernel,
        out_shape=jax.ShapeDtypeStruct((c_pad, 128), jnp.float32),
        grid=(n_tiles,),
        in_specs=[smem, smem,
                  pl.BlockSpec((_NRAW, rows, 128), lambda i: (0, i, 0))],
        out_specs=pl.BlockSpec((rows, 128), lambda i: (i, 0)),
        compiler_params=pltpu.CompilerParams(
            dimension_semantics=("parallel",)),
    )(dm, dc, x1t)

    p0 = p0_t.reshape(n_pad)[:n]
    return jnp.stack([p0, 1.0 - p0], axis=1)                       # (N, 2)


def init_params(key):
    """Deterministic parameter init (shapes match the PyTorch module)."""
    k1, k2, k3, k4 = jax.random.split(key, 4)
    return {
        "w1": jax.random.normal(k1, (4, 7), jnp.float32) * 0.3,   # fcm1.weight (out,in)
        "b1": jax.random.normal(k2, (4,), jnp.float32) * 0.1,     # fcm1.bias
        "g1": jnp.ones((4,), jnp.float32),                        # bm1.weight
        "be1": jnp.zeros((4,), jnp.float32),                      # bm1.bias
        "w2": jax.random.normal(k3, (2, 4), jnp.float32) * 0.3,   # fcm2.weight
        "b2": jax.random.normal(k4, (2,), jnp.float32) * 0.1,     # fcm2.bias
        "g2": jnp.ones((2,), jnp.float32),                        # bm2.weight
        "be2": jnp.zeros((2,), jnp.float32),                      # bm2.bias
    }


def _reference_forward(x1, params):
    """Pure-JAX reference mirroring the PyTorch graph (for sanity check)."""
    mean = jnp.mean(x1, axis=1)
    var = jnp.var(x1, axis=1, ddof=1)                 # torch.var_mean is unbiased by default
    x7 = jnp.concatenate([x1, jnp.stack([var, mean], axis=1)], axis=1)
    z = x7 @ params["w1"].T + params["b1"]
    bm, bv = jnp.mean(z, axis=0), jnp.var(z, axis=0)
    z = (z - bm) / jnp.sqrt(bv + BN_EPS) * params["g1"] + params["be1"]
    z = z @ params["w2"].T + params["b2"]
    bm, bv = jnp.mean(z, axis=0), jnp.var(z, axis=0)
    z = (z - bm) / jnp.sqrt(bv + BN_EPS) * params["g2"] + params["be2"]
    return jax.nn.softmax(z, axis=1)


if __name__ == "__main__":
    key = jax.random.PRNGKey(0)
    kx1, kx2, kp = jax.random.split(key, 3)
    params = init_params(kp)

    # Small batch (the module only has 5 input features): single tiny block.
    n_small = 8
    x1 = jax.random.normal(kx1, (n_small, 5), jnp.float32)
    x2 = jax.random.normal(kx2, (n_small, 5), jnp.float32)   # unused by forward(), signature parity
    out = jax.block_until_ready(network_forward(x1, x2, params))
    ref = _reference_forward(x1, params)
    assert out.shape == (n_small, 2)
    assert jnp.allclose(out, ref, atol=5e-3, rtol=0.0), (out, ref)
    assert jnp.allclose(jnp.sum(out, axis=1), 1.0, atol=5e-3)

    # Larger batch exercising the tiled two-pass path (multiple blocks on both
    # grid axes + remainder-lane masking, proving BatchNorm batch stats stay
    # exact under tiling).
    n_big = 3000
    xb = jax.random.normal(jax.random.PRNGKey(1), (n_big, 5), jnp.float32)
    outb = jax.block_until_ready(network_forward(xb, None, params, block_rows=8))
    refb = _reference_forward(xb, params)
    assert outb.shape == (n_big, 2)
    assert jnp.allclose(outb, refb, atol=5e-3, rtol=0.0)

    print("KERNEL_OK")
</pallas_src>

<mosaic_0001>
module attributes {stable_mosaic.version = 11 : i64} {
  func.func @_stats_kernel(%arg0: i32, %arg1: i32, %arg2: memref<1xi32, #tpu.memory_space<smem>>, %arg3: memref<4x7xf32, #tpu.memory_space<smem>>, %arg4: memref<4xf32, #tpu.memory_space<smem>>, %arg5: memref<5x8x128xf32, #tpu.memory_space<vmem>>, %arg6: memref<1x14x8x128xf32, #tpu.memory_space<vmem>>) attributes {dimension_semantics = [#tpu.dimension_semantics<parallel>, #tpu.dimension_semantics<arbitrary>], iteration_bounds = array<i64: 2, 1>, scalar_prefetch = 0 : i64, scratch_operands = 0 : i64, tpu.core_type = #tpu.core_type<tc>, window_params = [{transform_indices = @transform_0, window_bounds = array<i64: 1>}, {transform_indices = @transform_1, window_bounds = array<i64: 4, 7>}, {transform_indices = @transform_2, window_bounds = array<i64: 4>}, {transform_indices = @transform_3, window_bounds = array<i64: 5, 8, 128>}, {transform_indices = @transform_4, window_bounds = array<i64: 1, 14, 8, 128>}]} {
    %c0_i32 = arith.constant 0 : i32
    %0 = arith.cmpi eq, %arg1, %c0_i32 : i32
    %1 = arith.extui %0 : i1 to i32
    %c0_i32_0 = arith.constant 0 : i32
    %2 = arith.cmpi ne, %1, %c0_i32_0 : i32
    scf.if %2 {
      %cst_96 = arith.constant 0.000000e+00 : f32
      %243 = vector.broadcast %cst_96 : f32 to vector<1x14x8x128xf32>
      %c0_97 = arith.constant 0 : index
      %c0_98 = arith.constant 0 : index
      %c0_99 = arith.constant 0 : index
      %c0_100 = arith.constant 0 : index
      %244 = vector.load %arg6[%c0_97, %c0_98, %c0_99, %c0_100] : memref<1x14x8x128xf32, #tpu.memory_space<vmem>>, vector<1x14x8x128xf32>
      tpu.vector_store %arg6[%c0_97, %c0_98, %c0_99, %c0_100], %243 {strides = array<i32>} : memref<1x14x8x128xf32, #tpu.memory_space<vmem>>, vector<1x14x8x128xf32>,
    } else {
    }
    %c0 = arith.constant 0 : index
    %3 = memref.load %arg2[%c0] : memref<1xi32, #tpu.memory_space<smem>>
    %c1_i32 = arith.constant 1 : i32
    %4 = arith.muli %arg0, %c1_i32 : i32
    %5 = arith.addi %4, %arg1 : i32
    %c8_i32 = arith.constant 8 : i32
    %6 = arith.muli %5, %c8_i32 : i32
    %c128_i32 = arith.constant 128 : i32
    %7 = arith.muli %6, %c128_i32 : i32
    %c0_1 = arith.constant 0 : index
    %c0_2 = arith.constant 0 : index
    %8 = memref.load %arg3[%c0_1, %c0_2] : memref<4x7xf32, #tpu.memory_space<smem>>
    %c0_3 = arith.constant 0 : index
    %c1 = arith.constant 1 : index
    %9 = memref.load %arg3[%c0_3, %c1] : memref<4x7xf32, #tpu.memory_space<smem>>
    %c0_4 = arith.constant 0 : index
    %c2 = arith.constant 2 : index
    %10 = memref.load %arg3[%c0_4, %c2] : memref<4x7xf32, #tpu.memory_space<smem>>
    %c0_5 = arith.constant 0 : index
    %c3 = arith.constant 3 : index
    %11 = memref.load %arg3[%c0_5, %c3] : memref<4x7xf32, #tpu.memory_space<smem>>
    %c0_6 = arith.constant 0 : index
    %c4 = arith.constant 4 : index
    %12 = memref.load %arg3[%c0_6, %c4] : memref<4x7xf32, #tpu.memory_space<smem>>
    %c0_7 = arith.constant 0 : index
    %c5 = arith.constant 5 : index
    %13 = memref.load %arg3[%c0_7, %c5] : memref<4x7xf32, #tpu.memory_space<smem>>
    %c0_8 = arith.constant 0 : index
    %c6 = arith.constant 6 : index
    %14 = memref.load %arg3[%c0_8, %c6] : memref<4x7xf32, #tpu.memory_space<smem>>
    %c1_9 = arith.constant 1 : index
    %c0_10 = arith.constant 0 : index
    %15 = memref.load %arg3[%c1_9, %c0_10] : memref<4x7xf32, #tpu.memory_space<smem>>
    %c1_11 = arith.constant 1 : index
    %c1_12 = arith.constant 1 : index
    %16 = memref.load %arg3[%c1_11, %c1_12] : memref<4x7xf32, #tpu.memory_space<smem>>
    %c1_13 = arith.constant 1 : index
    %c2_14 = arith.constant 2 : index
    %17 = memref.load %arg3[%c1_13, %c2_14] : memref<4x7xf32, #tpu.memory_space<smem>>
    %c1_15 = arith.constant 1 : index
    %c3_16 = arith.constant 3 : index
    %18 = memref.load %arg3[%c1_15, %c3_16] : memref<4x7xf32, #tpu.memory_space<smem>>
    %c1_17 = arith.constant 1 : index
    %c4_18 = arith.constant 4 : index
    %19 = memref.load %arg3[%c1_17, %c4_18] : memref<4x7xf32, #tpu.memory_space<smem>>
    %c1_19 = arith.constant 1 : index
    %c5_20 = arith.constant 5 : index
    %20 = memref.load %arg3[%c1_19, %c5_20] : memref<4x7xf32, #tpu.memory_space<smem>>
    %c1_21 = arith.constant 1 : index
    %c6_22 = arith.constant 6 : index
    %21 = memref.load %arg3[%c1_21, %c6_22] : memref<4x7xf32, #tpu.memory_space<smem>>
    %c2_23 = arith.constant 2 : index
    %c0_24 = arith.constant 0 : index
    %22 = memref.load %arg3[%c2_23, %c0_24] : memref<4x7xf32, #tpu.memory_space<smem>>
    %c2_25 = arith.constant 2 : index
    %c1_26 = arith.constant 1 : index
    %23 = memref.load %arg3[%c2_25, %c1_26] : memref<4x7xf32, #tpu.memory_space<smem>>
    %c2_27 = arith.constant 2 : index
    %c2_28 = arith.constant 2 : index
    %24 = memref.load %arg3[%c2_27, %c2_28] : memref<4x7xf32, #tpu.memory_space<smem>>
    %c2_29 = arith.constant 2 : index
    %c3_30 = arith.constant 3 : index
    %25 = memref.load %arg3[%c2_29, %c3_30] : memref<4x7xf32, #tpu.memory_space<smem>>
    %c2_31 = arith.constant 2 : index
    %c4_32 = arith.constant 4 : index
    %26 = memref.load %arg3[%c2_31, %c4_32] : memref<4x7xf32, #tpu.memory_space<smem>>
    %c2_33 = arith.constant 2 : index
    %c5_34 = arith.constant 5 : index
    %27 = memref.load %arg3[%c2_33, %c5_34] : memref<4x7xf32, #tpu.memory_space<smem>>
    %c2_35 = arith.constant 2 : index
    %c6_36 = arith.constant 6 : index
    %28 = memref.load %arg3[%c2_35, %c6_36] : memref<4x7xf32, #tpu.memory_space<smem>>
    %c3_37 = arith.constant 3 : index
    %c0_38 = arith.constant 0 : index
    %29 = memref.load %arg3[%c3_37, %c0_38] : memref<4x7xf32, #tpu.memory_space<smem>>
    %c3_39 = arith.constant 3 : index
    %c1_40 = arith.constant 1 : index
    %30 = memref.load %arg3[%c3_39, %c1_40] : memref<4x7xf32, #tpu.memory_space<smem>>
    %c3_41 = arith.constant 3 : index
    %c2_42 = arith.constant 2 : index
    %31 = memref.load %arg3[%c3_41, %c2_42] : memref<4x7xf32, #tpu.memory_space<smem>>
    %c3_43 = arith.constant 3 : index
    %c3_44 = arith.constant 3 : index
    %32 = memref.load %arg3[%c3_43, %c3_44] : memref<4x7xf32, #tpu.memory_space<smem>>
    %c3_45 = arith.constant 3 : index
    %c4_46 = arith.constant 4 : index
    %33 = memref.load %arg3[%c3_45, %c4_46] : memref<4x7xf32, #tpu.memory_space<smem>>
    %c3_47 = arith.constant 3 : index
    %c5_48 = arith.constant 5 : index
    %34 = memref.load %arg3[%c3_47, %c5_48] : memref<4x7xf32, #tpu.memory_space<smem>>
    %c3_49 = arith.constant 3 : index
    %c6_50 = arith.constant 6 : index
    %35 = memref.load %arg3[%c3_49, %c6_50] : memref<4x7xf32, #tpu.memory_space<smem>>
    %c0_51 = arith.constant 0 : index
    %36 = memref.load %arg4[%c0_51] : memref<4xf32, #tpu.memory_space<smem>>
    %c1_52 = arith.constant 1 : index
    %37 = memref.load %arg4[%c1_52] : memref<4xf32, #tpu.memory_space<smem>>
    %c2_53 = arith.constant 2 : index
    %38 = memref.load %arg4[%c2_53] : memref<4xf32, #tpu.memory_space<smem>>
    %c3_54 = arith.constant 3 : index
    %39 = memref.load %arg4[%c3_54] : memref<4xf32, #tpu.memory_space<smem>>
    %cst = arith.constant 0.000000e+00 : f32
    %40 = vector.broadcast %cst : f32 to vector<8x128xf32>
    %cst_55 = arith.constant 0.000000e+00 : f32
    %41 = vector.broadcast %cst_55 : f32 to vector<8x128xf32>
    %cst_56 = arith.constant 0.000000e+00 : f32
    %42 = vector.broadcast %cst_56 : f32 to vector<8x128xf32>
    %cst_57 = arith.constant 0.000000e+00 : f32
    %43 = vector.broadcast %cst_57 : f32 to vector<8x128xf32>
    %cst_58 = arith.constant 0.000000e+00 : f32
    %44 = vector.broadcast %cst_58 : f32 to vector<8x128xf32>
    %cst_59 = arith.constant 0.000000e+00 : f32
    %45 = vector.broadcast %cst_59 : f32 to vector<8x128xf32>
    %cst_60 = arith.constant 0.000000e+00 : f32
    %46 = vector.broadcast %cst_60 : f32 to vector<8x128xf32>
    %cst_61 = arith.constant 0.000000e+00 : f32
    %47 = vector.broadcast %cst_61 : f32 to vector<8x128xf32>
    %cst_62 = arith.constant 0.000000e+00 : f32
    %48 = vector.broadcast %cst_62 : f32 to vector<8x128xf32>
    %cst_63 = arith.constant 0.000000e+00 : f32
    %49 = vector.broadcast %cst_63 : f32 to vector<8x128xf32>
    %cst_64 = arith.constant 0.000000e+00 : f32
    %50 = vector.broadcast %cst_64 : f32 to vector<8x128xf32>
    %cst_65 = arith.constant 0.000000e+00 : f32
    %51 = vector.broadcast %cst_65 : f32 to vector<8x128xf32>
    %cst_66 = arith.constant 0.000000e+00 : f32
    %52 = vector.broadcast %cst_66 : f32 to vector<8x128xf32>
    %cst_67 = arith.constant 0.000000e+00 : f32
    %53 = vector.broadcast %cst_67 : f32 to vector<8x128xf32>
    %c0_i32_68 = arith.constant 0 : i32
    %c8_i32_69 = arith.constant 8 : i32
    %54 = arith.muli %c0_i32_68, %c8_i32_69 : i32
    %55 = tpu.assume_multiple %54, 8 : i32
    %c0_70 = arith.constant 0 : index
    %56 = arith.index_cast %55 : i32 to index
    %c0_71 = arith.constant 0 : index
    %57 = vector.load %arg5[%c0_70, %56, %c0_71] : memref<5x8x128xf32, #tpu.memory_space<vmem>>, vector<1x8x128xf32>
    %58 = vector.shape_cast %57 : vector<1x8x128xf32> to vector<8x128xf32>
    %c1_72 = arith.constant 1 : index
    %59 = arith.index_cast %55 : i32 to index
    %c0_73 = arith.constant 0 : index
    %60 = vector.load %arg5[%c1_72, %59, %c0_73] : memref<5x8x128xf32, #tpu.memory_space<vmem>>, vector<1x8x128xf32>
    %61 = vector.shape_cast %60 : vector<1x8x128xf32> to vector<8x128xf32>
    %c2_74 = arith.constant 2 : index
    %62 = arith.index_cast %55 : i32 to index
    %c0_75 = arith.constant 0 : index
    %63 = vector.load %arg5[%c2_74, %62, %c0_75] : memref<5x8x128xf32, #tpu.memory_space<vmem>>, vector<1x8x128xf32>
    %64 = vector.shape_cast %63 : vector<1x8x128xf32> to vector<8x128xf32>
    %c3_76 = arith.constant 3 : index
    %65 = arith.index_cast %55 : i32 to index
    %c0_77 = arith.constant 0 : index
    %66 = vector.load %arg5[%c3_76, %65, %c0_77] : memref<5x8x128xf32, #tpu.memory_space<vmem>>, vector<1x8x128xf32>
    %67 = vector.shape_cast %66 : vector<1x8x128xf32> to vector<8x128xf32>
    %c4_78 = arith.constant 4 : index
    %68 = arith.index_cast %55 : i32 to index
    %c0_79 = arith.constant 0 : index
    %69 = vector.load %arg5[%c4_78, %68, %c0_79] : memref<5x8x128xf32, #tpu.memory_space<vmem>>, vector<1x8x128xf32>
    %70 = vector.shape_cast %69 : vector<1x8x128xf32> to vector<8x128xf32>
    %71 = arith.addf %58, %61 : vector<8x128xf32>
    %72 = arith.addf %71, %64 : vector<8x128xf32>
    %73 = arith.addf %72, %67 : vector<8x128xf32>
    %74 = arith.addf %73, %70 : vector<8x128xf32>
    %cst_80 = arith.constant 2.000000e-01 : f32
    %75 = vector.broadcast %cst_80 : f32 to vector<8x128xf32>
    %76 = arith.mulf %74, %75 : vector<8x128xf32>
    %77 = arith.subf %58, %76 : vector<8x128xf32>
    %78 = arith.subf %61, %76 : vector<8x128xf32>
    %79 = arith.subf %64, %76 : vector<8x128xf32>
    %80 = arith.subf %67, %76 : vector<8x128xf32>
    %81 = arith.subf %70, %76 : vector<8x128xf32>
    %82 = arith.mulf %77, %77 : vector<8x128xf32>
    %83 = arith.mulf %78, %78 : vector<8x128xf32>
    %84 = arith.addf %82, %83 : vector<8x128xf32>
    %85 = arith.mulf %79, %79 : vector<8x128xf32>
    %86 = arith.addf %84, %85 : vector<8x128xf32>
    %87 = arith.mulf %80, %80 : vector<8x128xf32>
    %88 = arith.addf %86, %87 : vector<8x128xf32>
    %89 = arith.mulf %81, %81 : vector<8x128xf32>
    %90 = arith.addf %88, %89 : vector<8x128xf32>
    %cst_81 = arith.constant 2.500000e-01 : f32
    %91 = vector.broadcast %cst_81 : f32 to vector<8x128xf32>
    %92 = arith.mulf %90, %91 : vector<8x128xf32>
    %93 = tpu.iota {dimensions = array<i32: 0>} : vector<8x128xi32>
    %94 = tpu.iota {dimensions = array<i32: 1>} : vector<8x128xi32>
    %95 = vector.broadcast %55 : i32 to vector<8x128xi32>
    %96 = arith.addi %95, %93 : vector<8x128xi32>
    %c128_i32_82 = arith.constant 128 : i32
    %97 = vector.broadcast %c128_i32_82 : i32 to vector<8x128xi32>
    %98 = arith.muli %96, %97 : vector<8x128xi32>
    %99 = vector.broadcast %7 : i32 to vector<8x128xi32>
    %100 = arith.addi %99, %98 : vector<8x128xi32>
    %101 = arith.addi %100, %94 : vector<8x128xi32>
    %102 = vector.broadcast %3 : i32 to vector<8x128xi32>
    %103 = arith.cmpi slt, %101, %102 : vector<8x128xi32>
    %104 = vector.broadcast %13 : f32 to vector<8x128xf32>
    %105 = arith.mulf %104, %92 : vector<8x128xf32>
    %106 = vector.broadcast %36 : f32 to vector<8x128xf32>
    %107 = arith.addf %106, %105 : vector<8x128xf32>
    %108 = vector.broadcast %14 : f32 to vector<8x128xf32>
    %109 = arith.mulf %108, %76 : vector<8x128xf32>
    %110 = arith.addf %107, %109 : vector<8x128xf32>
    %111 = vector.broadcast %8 : f32 to vector<8x128xf32>
    %112 = arith.mulf %111, %58 : vector<8x128xf32>
    %113 = arith.addf %110, %112 : vector<8x128xf32>
    %114 = vector.broadcast %9 : f32 to vector<8x128xf32>
    %115 = arith.mulf %114, %61 : vector<8x128xf32>
    %116 = arith.addf %113, %115 : vector<8x128xf32>
    %117 = vector.broadcast %10 : f32 to vector<8x128xf32>
    %118 = arith.mulf %117, %64 : vector<8x128xf32>
    %119 = arith.addf %116, %118 : vector<8x128xf32>
    %120 = vector.broadcast %11 : f32 to vector<8x128xf32>
    %121 = arith.mulf %120, %67 : vector<8x128xf32>
    %122 = arith.addf %119, %121 : vector<8x128xf32>
    %123 = vector.broadcast %12 : f32 to vector<8x128xf32>
    %124 = arith.mulf %123, %70 : vector<8x128xf32>
    %125 = arith.addf %122, %124 : vector<8x128xf32>
    %cst_83 = arith.constant 0.000000e+00 : f32
    %126 = vector.broadcast %cst_83 : f32 to vector<8x128xf32>
    %127 = arith.select %103, %125, %126 : vector<8x128xi1>, vector<8x128xf32>
    %128 = vector.broadcast %20 : f32 to vector<8x128xf32>
    %129 = arith.mulf %128, %92 : vector<8x128xf32>
    %130 = vector.broadcast %37 : f32 to vector<8x128xf32>
    %131 = arith.addf %130, %129 : vector<8x128xf32>
    %132 = vector.broadcast %21 : f32 to vector<8x128xf32>
    %133 = arith.mulf %132, %76 : vector<8x128xf32>
    %134 = arith.addf %131, %133 : vector<8x128xf32>
    %135 = vector.broadcast %15 : f32 to vector<8x128xf32>
    %136 = arith.mulf %135, %58 : vector<8x128xf32>
    %137 = arith.addf %134, %136 : vector<8x128xf32>
    %138 = vector.broadcast %16 : f32 to vector<8x128xf32>
    %139 = arith.mulf %138, %61 : vector<8x128xf32>
    %140 = arith.addf %137, %139 : vector<8x128xf32>
    %141 = vector.broadcast %17 : f32 to vector<8x128xf32>
    %142 = arith.mulf %141, %64 : vector<8x128xf32>
    %143 = arith.addf %140, %142 : vector<8x128xf32>
    %144 = vector.broadcast %18 : f32 to vector<8x128xf32>
    %145 = arith.mulf %144, %67 : vector<8x128xf32>
    %146 = arith.addf %143, %145 : vector<8x128xf32>
    %147 = vector.broadcast %19 : f32 to vector<8x128xf32>
    %148 = arith.mulf %147, %70 : vector<8x128xf32>
    %149 = arith.addf %146, %148 : vector<8x128xf32>
    %cst_84 = arith.constant 0.000000e+00 : f32
    %150 = vector.broadcast %cst_84 : f32 to vector<8x128xf32>
    %151 = arith.select %103, %149, %150 : vector<8x128xi1>, vector<8x128xf32>
    %152 = vector.broadcast %27 : f32 to vector<8x128xf32>
    %153 = arith.mulf %152, %92 : vector<8x128xf32>
    %154 = vector.broadcast %38 : f32 to vector<8x128xf32>
    %155 = arith.addf %154, %153 : vector<8x128xf32>
    %156 = vector.broadcast %28 : f32 to vector<8x128xf32>
    %157 = arith.mulf %156, %76 : vector<8x128xf32>
    %158 = arith.addf %155, %157 : vector<8x128xf32>
    %159 = vector.broadcast %22 : f32 to vector<8x128xf32>
    %160 = arith.mulf %159, %58 : vector<8x128xf32>
    %161 = arith.addf %158, %160 : vector<8x128xf32>
    %162 = vector.broadcast %23 : f32 to vector<8x128xf32>
    %163 = arith.mulf %162, %61 : vector<8x128xf32>
    %164 = arith.addf %161, %163 : vector<8x128xf32>
    %165 = vector.broadcast %24 : f32 to vector<8x128xf32>
    %166 = arith.mulf %165, %64 : vector<8x128xf32>
    %167 = arith.addf %164, %166 : vector<8x128xf32>
    %168 = vector.broadcast %25 : f32 to vector<8x128xf32>
    %169 = arith.mulf %168, %67 : vector<8x128xf32>
    %170 = arith.addf %167, %169 : vector<8x128xf32>
    %171 = vector.broadcast %26 : f32 to vector<8x128xf32>
    %172 = arith.mulf %171, %70 : vector<8x128xf32>
    %173 = arith.addf %170, %172 : vector<8x128xf32>
    %cst_85 = arith.constant 0.000000e+00 : f32
    %174 = vector.broadcast %cst_85 : f32 to vector<8x128xf32>
    %175 = arith.select %103, %173, %174 : vector<8x128xi1>, vector<8x128xf32>
    %176 = vector.broadcast %34 : f32 to vector<8x128xf32>
    %177 = arith.mulf %176, %92 : vector<8x128xf32>
    %178 = vector.broadcast %39 : f32 to vector<8x128xf32>
    %179 = arith.addf %178, %177 : vector<8x128xf32>
    %180 = vector.broadcast %35 : f32 to vector<8x128xf32>
    %181 = arith.mulf %180, %76 : vector<8x128xf32>
    %182 = arith.addf %179, %181 : vector<8x128xf32>
    %183 = vector.broadcast %29 : f32 to vector<8x128xf32>
    %184 = arith.mulf %183, %58 : vector<8x128xf32>
    %185 = arith.addf %182, %184 : vector<8x128xf32>
    %186 = vector.broadcast %30 : f32 to vector<8x128xf32>
    %187 = arith.mulf %186, %61 : vector<8x128xf32>
    %188 = arith.addf %185, %187 : vector<8x128xf32>
    %189 = vector.broadcast %31 : f32 to vector<8x128xf32>
    %190 = arith.mulf %189, %64 : vector<8x128xf32>
    %191 = arith.addf %188, %190 : vector<8x128xf32>
    %192 = vector.broadcast %32 : f32 to vector<8x128xf32>
    %193 = arith.mulf %192, %67 : vector<8x128xf32>
    %194 = arith.addf %191, %193 : vector<8x128xf32>
    %195 = vector.broadcast %33 : f32 to vector<8x128xf32>
    %196 = arith.mulf %195, %70 : vector<8x128xf32>
    %197 = arith.addf %194, %196 : vector<8x128xf32>
    %cst_86 = arith.constant 0.000000e+00 : f32
    %198 = vector.broadcast %cst_86 : f32 to vector<8x128xf32>
    %199 = arith.select %103, %197, %198 : vector<8x128xi1>, vector<8x128xf32>
    %200 = arith.addf %40, %127 : vector<8x128xf32>
    %201 = arith.addf %41, %151 : vector<8x128xf32>
    %202 = arith.addf %42, %175 : vector<8x128xf32>
    %203 = arith.addf %43, %199 : vector<8x128xf32>
    %204 = arith.mulf %127, %127 : vector<8x128xf32>
    %205 = arith.addf %44, %204 : vector<8x128xf32>
    %206 = arith.mulf %127, %151 : vector<8x128xf32>
    %207 = arith.addf %45, %206 : vector<8x128xf32>
    %208 = arith.mulf %127, %175 : vector<8x128xf32>
    %209 = arith.addf %46, %208 : vector<8x128xf32>
    %210 = arith.mulf %127, %199 : vector<8x128xf32>
    %211 = arith.addf %47, %210 : vector<8x128xf32>
    %212 = arith.mulf %151, %151 : vector<8x128xf32>
    %213 = arith.addf %48, %212 : vector<8x128xf32>
    %214 = arith.mulf %151, %175 : vector<8x128xf32>
    %215 = arith.addf %49, %214 : vector<8x128xf32>
    %216 = arith.mulf %151, %199 : vector<8x128xf32>
    %217 = arith.addf %50, %216 : vector<8x128xf32>
    %218 = arith.mulf %175, %175 : vector<8x128xf32>
    %219 = arith.addf %51, %218 : vector<8x128xf32>
    %220 = arith.mulf %175, %199 : vector<8x128xf32>
    %221 = arith.addf %52, %220 : vector<8x128xf32>
    %222 = arith.mulf %199, %199 : vector<8x128xf32>
    %223 = arith.addf %53, %222 : vector<8x128xf32>
    %c1_i32_87 = arith.constant 1 : i32
    %c0_88 = arith.constant 0 : index
    %c0_89 = arith.constant 0 : index
    %c0_90 = arith.constant 0 : index
    %c0_91 = arith.constant 0 : index
    %224 = vector.load %arg6[%c0_88, %c0_89, %c0_90, %c0_91] : memref<1x14x8x128xf32, #tpu.memory_space<vmem>>, vector<1x14x8x128xf32>
    %225 = vector.shape_cast %200 : vector<8x128xf32> to vector<1x8x128xf32>
    %226 = vector.shape_cast %201 : vector<8x128xf32> to vector<1x8x128xf32>
    %227 = vector.shape_cast %202 : vector<8x128xf32> to vector<1x8x128xf32>
    %228 = vector.shape_cast %203 : vector<8x128xf32> to vector<1x8x128xf32>
    %229 = vector.shape_cast %205 : vector<8x128xf32> to vector<1x8x128xf32>
    %230 = vector.shape_cast %207 : vector<8x128xf32> to vector<1x8x128xf32>
    %231 = vector.shape_cast %209 : vector<8x128xf32> to vector<1x8x128xf32>
    %232 = vector.shape_cast %211 : vector<8x128xf32> to vector<1x8x128xf32>
    %233 = vector.shape_cast %213 : vector<8x128xf32> to vector<1x8x128xf32>
    %234 = vector.shape_cast %215 : vector<8x128xf32> to vector<1x8x128xf32>
    %235 = vector.shape_cast %217 : vector<8x128xf32> to vector<1x8x128xf32>
    %236 = vector.shape_cast %219 : vector<8x128xf32> to vector<1x8x128xf32>
    %237 = vector.shape_cast %221 : vector<8x128xf32> to vector<1x8x128xf32>
    %238 = vector.shape_cast %223 : vector<8x128xf32> to vector<1x8x128xf32>
    %239 = tpu.concatenate %225, %226, %227, %228, %229, %230, %231, %232, %233, %234, %235, %236, %237, %238 in 0 : vector<1x8x128xf32>, vector<1x8x128xf32>, vector<1x8x128xf32>, vector<1x8x128xf32>, vector<1x8x128xf32>, vector<1x8x128xf32>, vector<1x8x128xf32>, vector<1x8x128xf32>, vector<1x8x128xf32>, vector<1x8x128xf32>, vector<1x8x128xf32>, vector<1x8x128xf32>, vector<1x8x128xf32>, vector<1x8x128xf32> -> vector<14x8x128xf32>
    %240 = vector.shape_cast %239 : vector<14x8x128xf32> to vector<1x14x8x128xf32>
    %241 = arith.addf %224, %240 : vector<1x14x8x128xf32>
    %c0_92 = arith.constant 0 : index
    %c0_93 = arith.constant 0 : index
    %c0_94 = arith.constant 0 : index
    %c0_95 = arith.constant 0 : index
    %242 = vector.load %arg6[%c0_92, %c0_93, %c0_94, %c0_95] : memref<1x14x8x128xf32, #tpu.memory_space<vmem>>, vector<1x14x8x128xf32>
    tpu.vector_store %arg6[%c0_92, %c0_93, %c0_94, %c0_95], %241 {strides = array<i32>} : memref<1x14x8x128xf32, #tpu.memory_space<vmem>>, vector<1x14x8x128xf32>,
    return
  }
  func.func @transform_0(%arg0: i32, %arg1: i32) -> i32 {
    %c0_i32 = arith.constant 0 : i32
    %c0_i32_0 = arith.constant 0 : i32
    return %c0_i32 : i32
  }
  func.func @transform_1(%arg0: i32, %arg1: i32) -> (i32, i32) {
    %c0_i32 = arith.constant 0 : i32
    %c0_i32_0 = arith.constant 0 : i32
    %c0_i32_1 = arith.constant 0 : i32
    return %c0_i32, %c0_i32_0 : i32, i32
  }
  func.func @transform_2(%arg0: i32, %arg1: i32) -> i32 {
    %c0_i32 = arith.constant 0 : i32
    %c0_i32_0 = arith.constant 0 : i32
    return %c0_i32 : i32
  }
  func.func @transform_3(%arg0: i32, %arg1: i32) -> (i32, i32, i32) {
    %c1_i32 = arith.constant 1 : i32
    %0 = arith.muli %arg0, %c1_i32 : i32
    %1 = arith.addi %0, %arg1 : i32
    %c0_i32 = arith.constant 0 : i32
    %c0_i32_0 = arith.constant 0 : i32
    %c0_i32_1 = arith.constant 0 : i32
    return %c0_i32, %1, %c0_i32_0 : i32, i32, i32
  }
  func.func @transform_4(%arg0: i32, %arg1: i32) -> (i32, i32, i32, i32) {
    %c0_i32 = arith.constant 0 : i32
    %c0_i32_0 = arith.constant 0 : i32
    %c0_i32_1 = arith.constant 0 : i32
    %c0_i32_2 = arith.constant 0 : i32
    return %arg0, %c0_i32, %c0_i32_0, %c0_i32_1 : i32, i32, i32, i32
  }
}

</mosaic_0001>

<bundles_post_ra>
// kernel: tpu_custom_call.1
= control target key start
LH: loop header
LB: loop body
LE: loop exit
PB: predicated region body
PF: predicated region fallthrough
CT: control target
= control target key end

     0   :  { %s1357_s0 = inlined_call_operand.<no memory space> [shape: s32[1], index: 0, kind: input, shape index: {}]   ;;  %s1358_s1 = inlined_call_operand.hbm [shape: f32[4,7], index: 1, kind: input, shape index: {}]   ;;  %s1359_s2 = inlined_call_operand.vmem [shape: f32[4], index: 2, kind: input, shape index: {}]   ;;  %s1360_s3 = inlined_call_operand.hbm [shape: f32[5,16,128], index: 3, kind: input, shape index: {}]   ;;  %s1361_s4 = inlined_call_operand.hbm [shape: f32[2,14,8,128], index: 4, kind: output, shape index: {}]  }
   0x1   :  { %1370 = sst [smem:[#allocation20_spill]] %s1358_s1 }
   0x2   :  { %1371 = sst [smem:[#allocation21_spill]] %s1359_s2 }
   0x3   :  { %1372 = sst [smem:[#allocation22_spill]] %s1360_s3 }
   0x4   :  { %9 = sst [smem:[#allocation2]] %s1357_s0 }
   0x5   :  { %10 = vsyncpa [#allocation6], 0 }
   0x6   :  { %11 = vsyncpa [#allocation7], 0 }
   0x7   :  { %12 = vsyncpa [#allocation4], 0 }
   0x8   :  { %14 = vsyncpa [#allocation4 + $0x1], 0 }
   0x9   :  { %15 = vsyncpa [#allocation5], 0 }
   0xa   :  { %17 = vsyncpa [#allocation5 + $0x1], 0  ;;  %s965_s17 = smov 0   ;;  %s967_s18 = smov 0  }
   0xb   :  { %s969_s19 = smov 0   ;;  %s971_s20 = smov 0  }
   0xc   :  { %s973_s21 = smov 0   ;;  %s975_s22 = smov 0  }
   0xd LB: > { %1373 = sst [smem:[#allocation15_spill]] %s910_s18  ;;  %s637_s0 = sadd.s32 4294967295, %s926_s22   ;;  %s926_s22 = sphi %s975_s22, %s23_s22   ;;  %s922_s21 = sphi %s973_s21, %s1397_s21   ;;  %s918_s20 = sphi %s971_s20, %s1396_s20   ;;  %s914_s19 = sphi %s969_s19, %s1395_s19   ;;  %s910_s18 = sphi %s967_s18, %s1394_s18   ;;  %s906_s17 = sphi %s965_s17, %s1393_s17  }
   0xe   : > { %1374 = sst [smem:[#allocation16_spill]] %s914_s19  ;;  %s638_s23 = sadd.s32 4294967294, %s926_s22  }
   0xf   : > { %1375 = sst [smem:[#allocation17_spill]] %s922_s21  ;;  %s107_s24 = sadd.s32 1, %s914_s19 }
  0x10   : > { %p114_p0 = scmp.ne.s32.totalorder %s914_s19, %s910_s18  ;;  %p115_p1 = scmp.eq.s32.totalorder %s926_s22, 0 }
  0x11   : > { %p120_p2 = scmp.ne.s32.totalorder %s910_s18, %s906_s17  ;;  %p1003_p3 = scmp.eq.s32.totalorder %s637_s0, 0 }
  0x12   : > { %p144_p4 = scmp.eq.s32.totalorder %s637_s0, 1  ;;  %p116_p5 = por %p115_p1, %p114_p0 }
  0x13   : > { %s1376_s25 = scalar_select %p1003_p3, 1, 0 }
  0x14   : > { %p150_p6 = scmp.eq.s32.totalorder %s638_s23, 1  ;;  %p1009_p7 = por %p1003_p3, %p120_p2 }
  0x15   : > { %p1013_p8 = por %p144_p4, %p114_p0  ;;  %p639_p10 = scmp.ge.s32.totalorder %s926_s22, 1 }
  0x16   : > { %s1377_s26 = scalar_select %p1009_p7, 1, 0 }
  0x17   : > { %s1378_s27 = scalar_select %p1013_p8, 1, 0 }
  0x18   : > { %p1017_p9 = por %p150_p6, %p120_p2  ;;  %p157_p11 = scmp.lt.s32.totalorder %s926_s22, 3 }
  0x19   : > { %p718_p1 = scmp.lt.s32.totalorder %s926_s22, 2  ;;  %s1381_s2 = sld [smem:[#allocation21_spill]] }
  0x1a   : > { %s1379_s28 = scalar_select %p1017_p9, 1, 0 }
  0x1b   : > { %p1024_p13 = pnand %p639_p10, %p157_p11  ;;  %p1034_p4 = pnand %p718_p1, %p116_p5 }
  0x1c   : > { %s193_s9 = sand.u32 1, %s914_s19   ;;  %s35_s10 = sadd.s32 1, %s922_s21 }
  0x1d   : > { %p701_p0 = pneg %p1024_p13  ;;  %s1384_s1 = sld [smem:[#allocation20_spill]] }
  0x1f   : > { %s182_s6 = sshll.u32 %s1381_s2, 4  ;;  %p1040_p2 = pnand %p701_p0, %p1003_p3  ;;  %s183_s6 = int_to_ptr.vmem [resolvable:$true] %s182_s6 }
  0x21   : > { %p780_p6 = pneg %p1040_p2 }
  0x23   : > { %s778_s13 = scalar_lea.hbm %s1384_s1, 64 }
  0x24   : > { %p779_p5 = scmp.ne.s32.totalorder %s1384_s1, %s778_s13  ;;  %p785_p1 = scmp.lt.u32.totalorder %s778_s13, %s1384_s1 }
  0x26   : > { %p781_p10 = pnand %p780_p6, %p779_p5 }
  0x28   : > { %p782_p11 = pneg %p781_p10 }
  0x2a   : > { %p787_p0 = pnand %p785_p1, %p782_p11 }
  0x2c   : > { %790 = shalt.err (!%p787_p0)
}
  0x2d   : > { %s928_s23 = smov [#allocation3]   ;;  %s791_s11 = scalar_lea.vmem %s183_s6, 16 }
  0x2e   : > { %704 = dma.hbm_to_smem (!%p1040_p2), %s1384_s1, 64, %s928_s23, [#allocation6]  }
  0x2f   : > { %p792_p12 = scmp.ne.s32.totalorder %s183_s6, %s791_s11  ;;  %p799_p7 = scmp.lt.s32.totalorder %s183_s6, %s183_s6 }
  0x30   : > { %p800_p5 = scmp.lt.s32.totalorder %s791_s11, %s791_s11 }
  0x31   : > { %p794_p9 = pnand %p792_p12, %p780_p6 }
  0x32   : > { %p801_p10 = por %p800_p5, %p799_p7 }
  0x33   : > { %p795_p8 = pneg %p794_p9 }
  0x35   : > { %p802_p3 = pnand %p801_p10, %p795_p8 }
  0x37   : > { %805 = shalt.err (!%p802_p3)
}
  0x38   : > { %s929_s12 = smov [#allocation8]   ;;  %p37_p11 = scmp.ge.s32.totalorder %s35_s10, 2 }
  0x39   : > { %707 = dma.vmem_to_smem (!%p1040_p2), %s183_s6, 16, %s929_s12, [#allocation7]  }
  0x3a   : > { %s685_s13 = smul.u32 40, %s193_s9  ;;  %s643_s14 = sshll.u32 %s922_s21, 7 }
  0x3b   : > { %s1399_s10 = smov (%p37_p11, %s35_s10), 0  ;;  %s1386_s3 = sld [smem:[#allocation22_spill]] }
  0x3c   : > { %1385 = sst [smem:[#allocation18_spill]] %s1399_s10  ;;  %s104_s0 = ssub.s32 %s922_s21, %s1399_s10 }
  0x3d   : > { %s197_s23 = scalar_lea.vmem [#allocation9], %s685_s13  ;;  %p105_p3 = scmp.eq.s32.totalorder %s104_s0, 0 }
  0x3e   : > { %s204_s6 = sshll.u32 %s197_s23, 4  ;;  %s1085_s5 = scalar_lea.sflag [#allocation4], %s193_s9  ;;  %s1076_s6 = int_to_ptr.vmem [resolvable:$true] %s204_s6 }
  0x3f   : > { %s1081_s30 = scalar_select %p105_p3, %s914_s19, %s107_s24  }
  0x40   : > { %p808_p8 = pneg %p1034_p4 }
  0x41   : > { %s1072_s8 = scalar_lea.hbm %s1386_s3, %s643_s14  ;;  %1387 = sst [smem:[#allocation19_spill]] %s1081_s30 }
  0x42   : > { %s806_s11 = scalar_lea.hbm %s1072_s8, 640  ;;  %s811_s14 = scalar_lea.hbm %s1386_s3, 1280 }
  0x43   : > { %p807_p7 = scmp.ne.s32.totalorder %s1072_s8, %s806_s11  ;;  %p812_p2 = scmp.lt.u32.totalorder %s1072_s8, %s1386_s3 }
  0x44   : > { %p813_p6 = scmp.lt.u32.totalorder %s811_s14, %s806_s11  ;;  %p815_p0 = scmp.lt.u32.totalorder %s806_s11, %s1072_s8 }
  0x45   : > { %p809_p9 = pnand %p808_p8, %p807_p7 }
  0x46   : > { %p814_p1 = por %p813_p6, %p812_p2 }
  0x47   : > { %p810_p12 = pneg %p809_p9 }
  0x48   : > { %p816_p5 = por %p815_p0, %p814_p1 }
  0x4a   : > { %p817_p10 = pnand %p816_p5, %p810_p12 }
  0x4c   : > { %820 = shalt.err (!%p817_p10)
}
  0x4d   : > { %s821_s24 = scalar_lea.vmem %s1076_s6, 640  ;;  %s930_s9 = smov [#allocation9]  }
  0x4e   : > { %p822_p11 = scmp.ne.s32.totalorder %s1076_s6, %s821_s24  ;;  %s826_s0 = sshll.u32 %s930_s9, 4  ;;  %s827_s0 = int_to_ptr.vmem [resolvable:$false] %s826_s0 }
  0x4f   : > { %s828_s23 = scalar_lea.vmem %s827_s0, 1280  ;;  %p829_p9 = scmp.lt.s32.totalorder %s1076_s6, %s827_s0 }
  0x50   : > { %p824_p3 = pnand %p822_p11, %p808_p8  ;;  %p830_p2 = scmp.lt.s32.totalorder %s828_s23, %s821_s24 }
  0x52   : > { %p825_p7 = pneg %p824_p3  ;;  %p831_p6 = por %p830_p2, %p829_p9 }
  0x54   : > { %p832_p1 = pnand %p831_p6, %p825_p7 }
  0x56   : > { %835 = shalt.err (!%p832_p1)
}
  0x57   : > { %s931_s11 = smov 256   ;;  %s932_s12 = smov 128  }
  0x58   : > { %s933_s13 = smov 8   ;;  %216 = sbr.rel (%p1024_p13) target bundleno = 169 (0xa9), region = 36 }
  0x59   : > { %711 = dma.hbm_to_vmem [thread:$0]  (!%p1034_p4), %s1072_s8, 640, %s1076_s6, %s1085_s5, %s931_s11, %s932_s12, %s933_s13  }
  0x5a   : > { %p1388_p8 = scmp.ne.s32.totalorder (!%p1024_p13), %s1376_s25, 0 }
  0x5f   : > { %889 = dma.done.wait (%p1388_p8), [#allocation6], 64  }
  0x60   : > { %891 = vsyncadd (%p1388_p8), [#allocation6], 4294967232 }
  0x61   : > { %893 = dma.done.wait (%p1388_p8), [#allocation7], 16  }
  0x62   : > { %895 = vsyncadd (%p1388_p8), [#allocation7], 4294967280  ;;  %s1124_s14 = sand.u32 1, %s910_s18   ;;  %p1389_p13 = scmp.ne.s32.totalorder %s1377_s26, 0 }
  0x63   : > { %s686_s29 = smul.u32 40, %s1124_s14  ;;  %s227_s7 = scalar_lea.sflag [#allocation4], %s1124_s14 }
  0x65   : > { %s230_s8 = scalar_lea.vmem [#allocation9], %s686_s29 }
  0x66   : > { %897 = dma.done.wait (%p1389_p13), %s227_s7, 640  }
  0x67   : > { %899 = vsyncadd (%p1389_p13), %s227_s7, 4294966656 }
  0x68   : > { %235 = sfence }
  0x69   : > { %v1132_v0 = vld [vmem:[%s230_s8] sm:$0xff]  ;;  %v1134_v1 = vld [vmem:[%s230_s8 + $0x8] sm:$0xff]  ;;  %v343_v2 = vlaneseq  ;;  %v1136_v3 = vld [vmem:[%s230_s8 + $0x10] sm:$0xff]  ;;  %s1140_s25 = sld [smem:[#allocation3]]  ;;  %s647_s26 = sshll.u32 %s918_s20, 10 }
  0x6a   : > { %v323_v4 = vadd.f32 %v1134_v1, %v1132_v0  ;;  %v1142_v5 = vld [vmem:[%s230_s8 + $0x18] sm:$0xff]  ;;  %s1146_s6 = sld [smem:[#allocation3 + $0x1]]  ;;  %v1148_v8 = vld [vmem:[%s230_s8 + $0x20] sm:$0xff]  ;;  %s1150_s5 = sld [smem:[#allocation2]]  ;;  %v350_v12 = vstv %s647_s26 }
  0x6b   : > { %v344_v6 = vshrl.u32 %v343_v2, 7  ;;  %s1153_s15 = sld [smem:[#allocation3 + $0x2]]  ;;  %s1155_s16 = sld [smem:[#allocation3 + $0x3]]  ;;  %v346_v14 = vand.u32 127, %v343_v2 }
  0x6c   : > { %v324_v7 = vadd.f32 %v1136_v3, %v323_v4  ;;  %s1157_s24 = sld [smem:[#allocation3 + $0x4]]  ;;  %s1159_s9 = sld [smem:[#allocation3 + $0x5]] }
  0x6d   : > { %v349_v10 = vmul.u32 128, %v344_v6  ;;  %s1162_s0 = sld [smem:[#allocation3 + $0x6]]  ;;  %s1164_s23 = sld [smem:[#allocation3 + $0x80]] }
  0x6e   : > { %v325_v9 = vadd.f32 %v1142_v5, %v324_v7  ;;  %s1168_s11 = sld [smem:[#allocation3 + $0x81]]  ;;  %s1170_s12 = sld [smem:[#allocation3 + $0x86]] }
  0x6f   : > { %s1172_s13 = sld [smem:[#allocation8]]  ;;  %v351_v15 = vadd.s32 %v350_v12, %v349_v10  ;;  %v362_v16 = vstv %s1140_s25  ;;  %s1175_s29 = sld [smem:[#allocation3 + $0x82]] }
  0x70   : > { %v326_v11 = vadd.f32 %v1148_v8, %v325_v9  ;;  %s1185_s7 = sld [smem:[#allocation3 + $0x85]]  ;;  %s1187_s8 = sld [smem:[#allocation8 + $0x1]]  ;;  %v365_v22 = vstv %s1146_s6  ;;  %v353_v27 = vstv %s1150_s5  ;;  %v1204_v28 = vmul.f32 %v362_v16, %v1132_v0 }
  0x71   : > { %s1192_s25 = sld [smem:[#allocation3 + $0x83]]  ;;  %s1194_s26 = sld [smem:[#allocation3 + $0x84]]  ;;  %v1200_v26 = vadd.s32 %v351_v15, %v346_v14  ;;  %v1211_v31 = vmul.f32 %v1134_v1, %v365_v22  ;;  %v368_v32 = vstv %s1153_s15  ;;  %v371_v36 = vstv %s1155_s16 }
  0x72   : > { %v1166_v13 = vmul.f32 0.2, %v326_v11  ;;  %s1196_s1 = sld [smem:[#allocation3 + $0x100]]  ;;  %s1198_s2 = sld [smem:[#allocation3 + $0x106]]  ;;  %v355_v34 = vstv %s1159_s9  ;;  %v1234_v42 = vmul.f32 %v1136_v3, %v368_v32  ;;  %v374_v43 = vstv %s1157_s24 }
  0x73   : > { %s1206_s6 = sld [smem:[#allocation3 + $0x105]]  ;;  %s1208_s3 = sld [smem:[#allocation8 + $0x2]]  ;;  %v359_v35 = vstv %s1162_s0  ;;  %v385_v39 = vstv %s1164_s23  ;;  %vm354_vm0 = vcmp.lt.s32.totalorder %v1200_v26, %v353_v27 }
  0x74   : > { %v328_v17 = vsub.f32 %v1132_v0, %v1166_v13  ;;  %v329_v18 = vsub.f32 %v1134_v1, %v1166_v13  ;;  %v330_v19 = vsub.f32 %v1136_v3, %v1166_v13  ;;  %v331_v20 = vsub.f32 %v1142_v5, %v1166_v13  ;;  %s1214_s10 = sld [smem:[#allocation3 + $0x101]]  ;;  %s1216_s21 = sld [smem:[#allocation3 + $0x180]] }
  0x75   : > { %v332_v21 = vsub.f32 %v1148_v8, %v1166_v13  ;;  %s1221_s30 = sld [smem:[#allocation3 + $0x181]]  ;;  %s1223_s19 = sld [smem:[#allocation3 + $0x185]]  ;;  %v382_v38 = vstv %s1170_s12  ;;  %v388_v40 = vstv %s1168_s11  ;;  %v357_v41 = vstv %s1172_s13 }
  0x76   : > { %v333_v23 = vmul.f32 %v328_v17, %v328_v17  ;;  %v334_v24 = vmul.f32 %v329_v18, %v329_v18  ;;  %v336_v25 = vmul.f32 %v330_v19, %v330_v19  ;;  %v338_v30 = vmul.f32 %v331_v20, %v331_v20  ;;  %s1228_s15 = sld [smem:[#allocation3 + $0x186]]  ;;  %s1230_s18 = sld [smem:[#allocation8 + $0x3]] }
  0x77   : > { %v340_v33 = vmul.f32 %v332_v21, %v332_v21  ;;  %v391_v44 = vstv %s1175_s29  ;;  %s1238_s9 = sld [smem:[#allocation3 + $0x102]]  ;;  %v360_v46 = vmul.f32 %v359_v35, %v1166_v13  ;;  %v378_v47 = vstv %s1185_s7  ;;  %s1248_s23 = sld [smem:[#allocation3 + $0x103]] }
  0x78   : > { %v335_v29 = vadd.f32 %v334_v24, %v333_v23  ;;  %s1240_s0 = sld [smem:[#allocation3 + $0x182]]  ;;  %v380_v48 = vstv %s1187_s8  ;;  %v383_v49 = vmul.f32 %v382_v38, %v1166_v13  ;;  %v386_v50 = vmul.f32 %v385_v39, %v1132_v0  ;;  %s1251_s11 = sld [smem:[#allocation3 + $0x183]] }
  0x79   : > { %v389_v51 = vmul.f32 %v1134_v1, %v388_v40  ;;  %v405_v52 = vstv %s1198_s2  ;;  %v392_v54 = vmul.f32 %v1136_v3, %v391_v44  ;;  %v394_v55 = vstv %s1192_s25  ;;  %s1256_s12 = sld [smem:[#allocation3 + $0x104]]  ;;  %p1390_p12 = scmp.ne.s32.totalorder %s1378_s27, 0 }
  0x7a   : > { %v337_v37 = vadd.f32 %v336_v25, %v335_v29  ;;  %v397_v56 = vstv %s1194_s26  ;;  %v401_v57 = vstv %s1206_s6  ;;  %v403_v58 = vstv %s1208_s3  ;;  %s1261_s13 = sld [smem:[#allocation3 + $0x184]]  ;;  %s688_s3 = smul.u32 1792, %s918_s20 }
  0x7b   : > { %v408_v59 = vstv %s1196_s1  ;;  %v424_v60 = vstv %s1223_s19  ;;  %v406_v62 = vmul.f32 %v405_v52, %v1166_v13  ;;  %v431_v2 = vstv %s1216_s21  ;;  %s687_s1 = smul.u32 112, %s1124_s14  ;;  %s514_s20 = scalar_lea.sflag [#allocation5], %s1124_s14 }
  0x7c   : > { %v339_v45 = vadd.f32 %v338_v30, %v337_v37  ;;  %v428_v63 = vstv %s1228_s15  ;;  %v411_v4 = vstv %s1214_s10  ;;  %v426_v6 = vstv %s1230_s18  ;;  %s1306_s10 = scalar_lea.hbm %s1361_s4, %s688_s3  ;;  %s934_s5 = smov [#allocation10]  }
  0x7d   : > { %v429_v7 = vmul.f32 %v428_v63, %v1166_v13  ;;  %v434_v9 = vstv %s1221_s30  ;;  %v409_v15 = vmul.f32 %v408_v59, %v1132_v0  ;;  %v414_v16 = vstv %s1238_s9  ;;  %s255_s2 = scalar_lea.vmem [#allocation10], %s687_s1  ;;  %s840_s16 = sshll.u32 %s934_s5, 4  ;;  %s841_s16 = int_to_ptr.vmem [resolvable:$false] %s840_s16 }
  0x7e   : > { %v341_v53 = vadd.f32 %v340_v33, %v339_v45  ;;  %v432_v17 = vmul.f32 %v431_v2, %v1132_v0  ;;  %v437_v18 = vstv %s1240_s0  ;;  %v412_v13 = vmul.f32 %v1134_v1, %v411_v4  ;;  %s527_s18 = sshll.u32 %s255_s2, 4  ;;  %s842_s24 = scalar_lea.vmem %s841_s16, 3584  ;;  %s1308_s18 = int_to_ptr.vmem [resolvable:$true] %s527_s18 }
  0x7f   : > { %v417_v23 = vstv %s1248_s23  ;;  %v435_v24 = vmul.f32 %v1134_v1, %v434_v9  ;;  %v440_v25 = vstv %s1251_s11  ;;  %v420_v0 = vstv %s1256_s12  ;;  %s836_s30 = scalar_lea.vmem %s1308_s18, 1792  ;;  %p843_p10 = scmp.lt.s32.totalorder %s1308_s18, %s841_s16 }
  0x80   : > { %v342_v61 = vmul.f32 0.25, %v341_v53  ;;  %v438_v35 = vmul.f32 %v1136_v3, %v437_v18  ;;  %v443_v37 = vstv %s1261_s13  ;;  %v372_v1 = vmul.f32 %v1142_v5, %v371_v36  ;;  %p837_p4 = scmp.ne.s32.totalorder %s1308_s18, %s836_s30  ;;  %p844_p11 = scmp.lt.s32.totalorder %s842_s24, %s836_s30 }
  0x81   : > { %v395_v44 = vmul.f32 %v1142_v5, %v394_v55  ;;  %v418_v45 = vmul.f32 %v1142_v5, %v417_v23  ;;  %v421_v36 = vmul.f32 %v1148_v8, %v420_v0  ;;  %v444_v52 = vmul.f32 %v1148_v8, %v443_v37 }
  0x82   : > { %v356_v10 = vmul.f32 %v355_v34, %v342_v61  ;;  %v379_v11 = vmul.f32 %v378_v47, %v342_v61  ;;  %v402_v12 = vmul.f32 %v401_v57, %v342_v61  ;;  %v425_v14 = vmul.f32 %v424_v60, %v342_v61  ;;  %p838_p0 = pnand %p837_p4, %p1390_p12  ;;  %p845_p3 = por %p844_p11, %p843_p10 }
  0x83   : > { %v415_v34 = vmul.f32 %v1136_v3, %v414_v16 }
  0x84   : > { %v358_v19 = vadd.f32 %v357_v41, %v356_v10  ;;  %v381_v20 = vadd.f32 %v380_v48, %v379_v11  ;;  %v404_v21 = vadd.f32 %v403_v58, %v402_v12  ;;  %v427_v22 = vadd.f32 %v426_v6, %v425_v14  ;;  %p839_p5 = pneg %p838_p0 }
  0x86   : > { %v361_v29 = vadd.f32 %v360_v46, %v358_v19  ;;  %v384_v30 = vadd.f32 %v383_v49, %v381_v20  ;;  %v407_v32 = vadd.f32 %v406_v62, %v404_v21  ;;  %v430_v33 = vadd.f32 %v429_v7, %v427_v22  ;;  %p846_p7 = pnand %p845_p3, %p839_p5 }
  0x87   : > { %v441_v46 = vmul.f32 %v1142_v5, %v440_v25 }
  0x88   : > { %v364_v38 = vadd.f32 %v1204_v28, %v361_v29  ;;  %v387_v39 = vadd.f32 %v386_v50, %v384_v30  ;;  %v410_v40 = vadd.f32 %v409_v15, %v407_v32  ;;  %v433_v41 = vadd.f32 %v432_v17, %v430_v33 }
  0x89   : > { %v375_v28 = vmul.f32 %v1148_v8, %v374_v43  ;;  %v398_v50 = vmul.f32 %v1148_v8, %v397_v56 }
  0x8a   : > { %v367_v47 = vadd.f32 %v1211_v31, %v364_v38  ;;  %v390_v48 = vadd.f32 %v389_v51, %v387_v39  ;;  %v413_v3 = vadd.f32 %v412_v13, %v410_v40  ;;  %v436_v49 = vadd.f32 %v435_v24, %v433_v41 }
  0x8c   : > { %v370_v53 = vadd.f32 %v1234_v42, %v367_v47  ;;  %v393_v55 = vadd.f32 %v392_v54, %v390_v48  ;;  %v416_v57 = vadd.f32 %v415_v34, %v413_v3  ;;  %v439_v5 = vadd.f32 %v438_v35, %v436_v49 }
  0x8e   : > { %v373_v31 = vadd.f32 %v372_v1, %v370_v53  ;;  %v396_v51 = vadd.f32 %v395_v44, %v393_v55  ;;  %v419_v58 = vadd.f32 %v418_v45, %v416_v57  ;;  %v442_v59 = vadd.f32 %v441_v46, %v439_v5 }
  0x90   : > { %v376_v43 = vadd.f32 %v375_v28, %v373_v31  ;;  %v399_v60 = vadd.f32 %v398_v50, %v396_v51  ;;  %v422_v56 = vadd.f32 %v421_v36, %v419_v58  ;;  %v445_v61 = vadd.f32 %v444_v52, %v442_v59 }
  0x92   : > { %v377_v62 = vsel %vm354_vm0, %v376_v43, 0.0  ;;  %v400_v63 = vsel %vm354_vm0, %v399_v60, 0.0  ;;  %v423_v8 = vsel %vm354_vm0, %v422_v56, 0.0  ;;  %v446_v42 = vsel %vm354_vm0, %v445_v61, 0.0 }
  0x93   : > { %v451_v54 = vmul.f32 %v377_v62, %v377_v62  ;;  %v453_v2 = vmul.f32 %v400_v63, %v377_v62  ;;  %v455_v4 = vmul.f32 %v423_v8, %v377_v62  ;;  %v457_v6 = vmul.f32 %v446_v42, %v377_v62  ;;  %499 = vst [vmem:[%s255_s2] sm:$0xff] %v377_v62 }
  0x94   : > { %500 = vst [vmem:[%s255_s2 + $0x8] sm:$0xff] %v400_v63  ;;  %501 = vst [vmem:[%s255_s2 + $0x10] sm:$0xff] %v423_v8  ;;  %v459_v7 = vmul.f32 %v400_v63, %v400_v63  ;;  %v461_v26 = vmul.f32 %v423_v8, %v400_v63  ;;  %v463_v27 = vmul.f32 %v446_v42, %v400_v63 }
  0x95   : > { %502 = vst [vmem:[%s255_s2 + $0x18] sm:$0xff] %v446_v42  ;;  %v465_v9 = vmul.f32 %v423_v8, %v423_v8  ;;  %503 = vst [vmem:[%s255_s2 + $0x20] sm:$0xff] %v451_v54  ;;  %v467_v10 = vmul.f32 %v446_v42, %v423_v8  ;;  %v469_v11 = vmul.f32 %v446_v42, %v446_v42 }
  0x96   : > { %504 = vst [vmem:[%s255_s2 + $0x28] sm:$0xff] %v453_v2  ;;  %505 = vst [vmem:[%s255_s2 + $0x30] sm:$0xff] %v455_v4 }
  0x97   : > { %506 = vst [vmem:[%s255_s2 + $0x38] sm:$0xff] %v457_v6  ;;  %507 = vst [vmem:[%s255_s2 + $0x40] sm:$0xff] %v459_v7 }
  0x98   : > { %508 = vst [vmem:[%s255_s2 + $0x48] sm:$0xff] %v461_v26  ;;  %509 = vst [vmem:[%s255_s2 + $0x50] sm:$0xff] %v463_v27 }
  0x99   : > { %510 = vst [vmem:[%s255_s2 + $0x58] sm:$0xff] %v465_v9  ;;  %511 = vst [vmem:[%s255_s2 + $0x60] sm:$0xff] %v467_v10 }
  0x9a   : > { %512 = vst [vmem:[%s255_s2 + $0x68] sm:$0xff] %v469_v11 }
  0x9b   : > { %849 = shalt.err (!%p846_p7)
}
  0x9c   : > { %s850_s29 = scalar_lea.hbm %s1306_s10, 1792  ;;  %s854_s25 = scalar_lea.hbm %s1361_s4, 3584 }
  0x9d   : > { %p851_p9 = scmp.ne.s32.totalorder %s1306_s10, %s850_s29  ;;  %p855_p1 = scmp.lt.u32.totalorder %s1306_s10, %s1361_s4 }
  0x9e   : > { %p856_p8 = scmp.lt.u32.totalorder %s854_s25, %s850_s29  ;;  %p858_p4 = scmp.lt.u32.totalorder %s850_s29, %s1306_s10 }
  0x9f   : > { %p852_p2 = pnand %p851_p9, %p1390_p12 }
  0xa0   : > { %p857_p13 = por %p856_p8, %p855_p1 }
  0xa1   : > { %p853_p6 = pneg %p852_p2 }
  0xa2   : > { %p859_p0 = por %p858_p4, %p857_p13 }
  0xa4   : > { %p860_p5 = pnand %p859_p0, %p853_p6 }
  0xa6   : > { %863 = shalt.err (!%p860_p5)
}
  0xa7   : > { %s935_s15 = smov 128   ;;  %s936_s9 = smov 8  }
  0xa8   : > { %699 = dma.vmem_to_hbm [thread:$0]  (%p1390_p12), %s1308_s18, 1792, %s1306_s10, %s514_s20, %s935_s15, %s935_s15, %s936_s9  }
  0xa9 PF: > { %s542_s0 = sand.u32 1, %s906_s17   ;;  %p1391_p10 = scmp.ne.s32.totalorder %s1379_s28, 0 }
  0xaa   : > { %p1392_p11 = scmp.ge.s32.totalorder %s926_s22, 2  ;;  %s543_s23 = scalar_lea.sflag [#allocation5], %s542_s0 }
  0xac   : > { %p713_p3 = pnand %p1392_p11, %p1391_p10 }
  0xae   : > { %901 = dma.done.wait (!%p713_p3), %s543_s23, 1792  }
  0xaf   : > { %903 = vsyncadd (!%p713_p3), %s543_s23, 4294965504  ;;  %s23_s22 = sadd.s32 1, %s926_s22   ;;  %s1393_s17 = sld [smem:[#allocation15_spill]] }
  0xb0   : > { %p20_p7 = scmp.ge.s32.totalorder %s23_s22, 4   ;;  %s1394_s18 = sld [smem:[#allocation16_spill]] }
  0xb1   : > { %s1395_s19 = sld [smem:[#allocation19_spill]]  ;;  %s1396_s20 = sld [smem:[#allocation17_spill]] }
  0xb2   : > { %s1397_s21 = sld [smem:[#allocation18_spill]]  ;;  %22 = sbr.rel (!%p20_p7) target bundleno = 13 (0xd), region = 99 }
  0xb9   :  { %548 = vsyncpa [#allocation4], 1 }
  0xba   :  { %550 = vsyncpa [#allocation4 + $0x1], 1 }
  0xbb   :  { %551 = vsyncpa [#allocation5], 1 }
  0xbc   :  { %553 = vsyncpa [#allocation5 + $0x1], 1 }
  0xbd   :  { %554 = vsyncpa [#allocation6], 1 }
  0xbe   :  { %556 = vsyncpa [#allocation6 + $0x1], 1 }
  0xbf   :  { %557 = vsyncpa [#allocation7], 1 }
  0xc0   :  { %559 = vsyncpa [#allocation7 + $0x1], 1 }

</bundles_post_ra>
